<compile_context>
chip_gen: v7x
topology: tpu7x:2x2x1
jax: 0.10.0
libtpu: 0.0.40
codegen_flags: <defaults>
</compile_context>

<pallas_src>
import functools

import jax
import jax.numpy as jnp
from jax import lax
from jax.experimental import pallas as pl
from jax.experimental.pallas import tpu as pltpu


def _attention_kernel(enc_ref, v_ref, out_ref, logits_ref, *, seq_len, mask_tail):
    """One (batch-block, seq-chunk) grid step.

    enc_ref:    (block_s, block_b, H)   encoder chunk, original (S,B,H) layout
    v_ref:      (block_b, H) f32        v = hidden @ W (precomputed in wrapper)
    out_ref:    (seq_len, block_b)      softmax weights (written on last chunk)
    logits_ref: (S_pad, block_b) f32    VMEM scratch accumulating logits
    """
    si = pl.program_id(1)
    block_s = enc_ref.shape[0]
    start = pl.multiple_of(si * block_s, block_s)

    # Per-chunk f32 upcast only -- never a full-(S, block_b, H) temporary.
    enc = enc_ref[...].astype(jnp.float32)
    # e[s,b] = sum_h enc[s,b,h] * v[b,h]   (VPU broadcast-multiply + lane reduce)
    e = jnp.sum(enc * v_ref[...][None, :, :], axis=-1)          # (block_s, block_b)

    if mask_tail:
        # Static flag: only emitted when grid_s * block_s > S (ragged last chunk).
        row = start + lax.broadcasted_iota(jnp.int32, e.shape, 0)
        e = jnp.where(row < seq_len, e, jnp.float32(-1e30))

    logits_ref[pl.ds(start, block_s), :] = e

    @pl.when(si == pl.num_programs(1) - 1)
    def _finalize():
        lg = logits_ref[...]                                    # (S_pad, block_b) f32
        m = jnp.max(lg, axis=0, keepdims=True)
        p = jnp.exp(lg - m)
        inv = pl.reciprocal(jnp.sum(p, axis=0, keepdims=True))  # exact: keeps 1e-5 tol
        out_ref[...] = (p[:seq_len, :] * inv).astype(out_ref.dtype)


def _choose_tiling(S, B, H, enc_itemsize, out_itemsize):
    """VMEM-budget-aware tile selection (v5e/v6e: 128 MiB; v7x: 64 MiB per TC)."""
    LANE, SUB = 128, 8
    try:
        cap = int(pltpu.get_tpu_info().vmem_capacity_bytes)
    except Exception:  # interpret mode / older runtimes
        cap = 64 << 20
    budget = cap // 3  # leave headroom for double-buffering + compiler scratch

    def usage(bb, bs):
        s_pad = pl.cdiv(S, bs) * bs
        return (2 * bs * bb * H * enc_itemsize      # enc block, double-buffered
                + 2 * bb * H * 4                    # v block (f32), double-buffered
                + 2 * S * bb * out_itemsize         # out block, double-buffered
                + s_pad * bb * 4                    # f32 logits scratch
                + bs * bb * H * 4)                  # in-kernel f32 chunk temporary

    # Lane-dense batch tile (full B when B <= 128).  Grow only for huge-B /
    # small-S*H shapes, keeping >= 2 batch grid steps for pipelining / megacore.
    if B <= LANE:
        block_b = B
    else:
        block_b = LANE
        for cand in (512, 256):
            if B >= 2 * cand and usage(cand, min(S, 256)) <= budget:
                block_b = cand
                break

    # Largest multiple-of-8 sequence chunk that keeps the working set in budget.
    if S <= SUB or usage(block_b, S) <= budget:
        block_s = S
    else:
        fixed = (2 * block_b * H * 4 + 2 * S * block_b * out_itemsize
                 + (S + SUB) * block_b * 4)
        per_row = block_b * H * (2 * enc_itemsize + 4)
        avail = max(budget - fixed, per_row * SUB)
        block_s = max(SUB, min(S, avail // per_row // SUB * SUB))

    # Guarantee >= 2 pipeline steps for non-trivial single-block problems
    # (otherwise DMA-in -> compute -> DMA-out run serially).
    if pl.cdiv(B, block_b) * pl.cdiv(S, block_s) < 2 and S >= 4 * SUB:
        block_s = min(block_s, (pl.cdiv(S, 4) + SUB - 1) // SUB * SUB)

    est = usage(block_b, block_s)
    vmem_limit = int(max(min(cap * 3 // 4, 128 << 20), est + (8 << 20)))
    return block_b, block_s, vmem_limit


def attention_general(hidden, encoder_outputs, weight, bias=None, *,
                      block_b=None, block_s=None):
    """hidden: (1,B,H); encoder_outputs: (S,B,H); weight: (H,H) nn.Linear weight.

    Returns attention weights of shape (B, 1, S), matching the PyTorch module.
    The Linear bias contributes a per-batch constant to every logit and cancels
    exactly in the softmax, so it is not read.
    """
    del bias  # exact no-op under the per-row softmax
    S, B, H = encoder_outputs.shape
    enc_isz = jnp.dtype(encoder_outputs.dtype).itemsize
    out_isz = enc_isz

    auto_bb, auto_bs, vmem_limit = _choose_tiling(S, B, H, enc_isz, out_isz)
    block_b = auto_bb if block_b is None else block_b
    block_s = auto_bs if block_s is None else block_s
    grid_b = pl.cdiv(B, block_b)
    grid_s = pl.cdiv(S, block_s)

    # v[b,h] = sum_k hidden[b,k] * W[k,h]: tiny (B,H)@(H,H), done once in XLA so
    # the kernel carries no W buffer and no per-step MXU work.
    hid2d = hidden.reshape(B, H)
    v = jnp.dot(hid2d, weight, precision=lax.Precision.HIGHEST,
                preferred_element_type=jnp.float32)
    b_pad = grid_b * block_b
    if b_pad != B:  # cheap (B,H) pad: keeps ragged boundary batch columns defined
        v = jnp.pad(v, ((0, b_pad - B), (0, 0)))

    kernel = functools.partial(_attention_kernel, seq_len=S,
                               mask_tail=(grid_s * block_s != S))

    out_sb = pl.pallas_call(
        kernel,
        out_shape=jax.ShapeDtypeStruct((S, B), encoder_outputs.dtype),
        grid_spec=pltpu.PrefetchScalarGridSpec(
            num_scalar_prefetch=0,
            grid=(grid_b, grid_s),
            in_specs=[
                pl.BlockSpec((block_s, block_b, H), lambda i, s: (s, i, 0)),  # enc
                pl.BlockSpec((block_b, H), lambda i, s: (i, 0)),              # v
            ],
            out_specs=pl.BlockSpec((S, block_b), lambda i, s: (0, i)),
            scratch_shapes=[pltpu.VMEM((grid_s * block_s, block_b), jnp.float32)],
        ),
        compiler_params=pltpu.CompilerParams(
            dimension_semantics=("parallel", "arbitrary"),
            vmem_limit_bytes=vmem_limit),
        cost_estimate=pl.CostEstimate(
            flops=2 * S * B * H,
            transcendentals=S * B,
            bytes_accessed=S * B * H * enc_isz + B * H * 4 + S * B * out_isz),
    )(encoder_outputs, v)

    # (S, B) -> (B, 1, S): tiny transpose of the weights only (no H factor).
    return jnp.transpose(out_sb, (1, 0))[:, None, :]


def _reference(hidden, encoder_outputs, weight, bias):
    # Pure-JAX reference mirroring the PyTorch code line by line (bias included).
    hp = lax.Precision.HIGHEST
    energy = jnp.einsum('sbh,kh->sbk', encoder_outputs, weight, precision=hp) + bias
    energy = jnp.transpose(energy, (1, 0, 2))                            # (B,S,H)
    hid = jnp.transpose(hidden, (1, 2, 0))                               # (B,H,1)
    e = jnp.einsum('bsh,bhk->bsk', energy, hid, precision=hp)[..., 0]    # (B,S)
    return jax.nn.softmax(e, axis=1)[:, None, :]                         # (B,1,S)


def _run_case(key, S, B, H, **kw):
    k_enc, k_hid, k_w, k_b = jax.random.split(key, 4)
    enc = jax.random.normal(k_enc, (S, B, H), dtype=jnp.float32)
    hid = jax.random.normal(k_hid, (1, B, H), dtype=jnp.float32)
    bound = 1.0 / (H ** 0.5)   # PyTorch-style nn.Linear uniform init bound
    w = jax.random.uniform(k_w, (H, H), jnp.float32, -bound, bound)
    b = jax.random.uniform(k_b, (H,), jnp.float32, -bound, bound)

    out = jax.block_until_ready(attention_general(hid, enc, w, b, **kw))
    ref = _reference(hid, enc, w, b)
    assert out.shape == (B, 1, S), out.shape
    assert jnp.allclose(out, ref, atol=1e-5, rtol=1e-5), (
        f"mismatch vs reference (S={S}, B={B}, H={H})")


if __name__ == "__main__":
    key = jax.random.PRNGKey(0)
    k1, k2 = jax.random.split(key)
    # Canonical tiny decoder-step shape (single grid step, full-dim blocks).
    _run_case(k1, S=8, B=2, H=32)
    # Multi-step grid: exercises the S-chunked scratch accumulation, pl.when
    # finalize, dynamic-offset stores and the lane-dense 128-wide batch tile.
    _run_case(k2, S=48, B=128, H=128, block_s=16)
    print("KERNEL_OK")
</pallas_src>

<mosaic_0001>
module attributes {stable_mosaic.version = 11 : i64} {
  func.func @_attention_kernel(%arg0: i32, %arg1: i32, %arg2: memref<8x2x32xf32, #tpu.memory_space<vmem>>, %arg3: memref<2x32xf32, #tpu.memory_space<vmem>>, %arg4: memref<8x2xf32, #tpu.memory_space<vmem>>, %arg5: memref<8x2xf32, #tpu.memory_space<vmem>>) attributes {dimension_semantics = [#tpu.dimension_semantics<parallel>, #tpu.dimension_semantics<arbitrary>], iteration_bounds = array<i64: 1, 1>, scalar_prefetch = 0 : i64, scratch_operands = 1 : i64, tpu.core_type = #tpu.core_type<tc>, window_params = [{transform_indices = @transform_0, window_bounds = array<i64: 8, 2, 32>}, {transform_indices = @transform_1, window_bounds = array<i64: 2, 32>}, {transform_indices = @transform_2, window_bounds = array<i64: 8, 2>}]} {
    %c8_i32 = arith.constant 8 : i32
    %0 = arith.muli %arg1, %c8_i32 : i32
    %1 = tpu.assume_multiple %0, 8 : i32
    %c0 = arith.constant 0 : index
    %c0_0 = arith.constant 0 : index
    %c0_1 = arith.constant 0 : index
    %2 = vector.load %arg2[%c0, %c0_0, %c0_1] : memref<8x2x32xf32, #tpu.memory_space<vmem>>, vector<8x2x32xf32>
    %c0_2 = arith.constant 0 : index
    %c0_3 = arith.constant 0 : index
    %3 = vector.load %arg3[%c0_2, %c0_3] : memref<2x32xf32, #tpu.memory_space<vmem>>, vector<2x32xf32>
    %4 = vector.shape_cast %3 : vector<2x32xf32> to vector<1x2x32xf32>
    %5 = vector.broadcast %4 : vector<1x2x32xf32> to vector<8x2x32xf32>
    %6 = arith.mulf %2, %5 : vector<8x2x32xf32>
    %cst = arith.constant dense<0.000000e+00> : vector<8x2xf32>
    %7 = vector.multi_reduction <add>, %6, %cst [2] : vector<8x2x32xf32> to vector<8x2xf32>
    %8 = arith.index_cast %1 : i32 to index
    %c0_4 = arith.constant 0 : index
    %9 = vector.load %arg5[%8, %c0_4] : memref<8x2xf32, #tpu.memory_space<vmem>>, vector<8x2xf32>
    tpu.vector_store %arg5[%8, %c0_4], %7 {strides = array<i32>} : memref<8x2xf32, #tpu.memory_space<vmem>>, vector<8x2xf32>,
    %c0_i32 = arith.constant 0 : i32
    %10 = arith.cmpi eq, %arg1, %c0_i32 : i32
    %11 = arith.extui %10 : i1 to i32
    %c0_i32_5 = arith.constant 0 : i32
    %12 = arith.cmpi ne, %11, %c0_i32_5 : i32
    scf.if %12 {
      %c0_6 = arith.constant 0 : index
      %c0_7 = arith.constant 0 : index
      %13 = vector.load %arg5[%c0_6, %c0_7] : memref<8x2xf32, #tpu.memory_space<vmem>>, vector<8x2xf32>
      %cst_8 = arith.constant dense<0xFF800000> : vector<2xf32>
      %14 = vector.multi_reduction <maximumf>, %13, %cst_8 [0] : vector<8x2xf32> to vector<2xf32>
      %15 = vector.shape_cast %14 : vector<2xf32> to vector<1x2xf32>
      %16 = vector.broadcast %15 : vector<1x2xf32> to vector<8x2xf32>
      %17 = arith.subf %13, %16 : vector<8x2xf32>
      %18 = math.exp %17 : vector<8x2xf32>
      %cst_9 = arith.constant dense<0.000000e+00> : vector<2xf32>
      %19 = vector.multi_reduction <add>, %18, %cst_9 [0] : vector<8x2xf32> to vector<2xf32>
      %20 = vector.shape_cast %19 : vector<2xf32> to vector<1x2xf32>
      %21 = tpu.reciprocal %20 : vector<1x2xf32> -> vector<1x2xf32>
      %22 = vector.broadcast %21 : vector<1x2xf32> to vector<8x2xf32>
      %23 = arith.mulf %18, %22 : vector<8x2xf32>
      %c0_10 = arith.constant 0 : index
      %c0_11 = arith.constant 0 : index
      %24 = vector.load %arg4[%c0_10, %c0_11] : memref<8x2xf32, #tpu.memory_space<vmem>>, vector<8x2xf32>
      tpu.vector_store %arg4[%c0_10, %c0_11], %23 {strides = array<i32>} : memref<8x2xf32, #tpu.memory_space<vmem>>, vector<8x2xf32>,
    } else {
    }
    return
  }
  func.func @transform_0(%arg0: i32, %arg1: i32) -> (i32, i32, i32) {
    %c0_i32 = arith.constant 0 : i32
    %c0_i32_0 = arith.constant 0 : i32
    return %arg1, %arg0, %c0_i32 : i32, i32, i32
  }
  func.func @transform_1(%arg0: i32, %arg1: i32) -> (i32, i32) {
    %c0_i32 = arith.constant 0 : i32
    %c0_i32_0 = arith.constant 0 : i32
    return %arg0, %c0_i32 : i32, i32
  }
  func.func @transform_2(%arg0: i32, %arg1: i32) -> (i32, i32) {
    %c0_i32 = arith.constant 0 : i32
    %c0_i32_0 = arith.constant 0 : i32
    return %c0_i32, %arg0 : i32, i32
  }
}

</mosaic_0001>

<bundles_post_ra>
// kernel: tpu_custom_call.1
= control target key start
LH: loop header
LB: loop body
LE: loop exit
PB: predicated region body
PF: predicated region fallthrough
CT: control target
= control target key end

     0   :  { %7 = vsyncpa [#allocation4], 0  ;;  %s189_s9 = smov [#allocation3]   ;;  %s237_s0 = inlined_call_operand.hbm [shape: f32[8,2,32], index: 0, kind: input, shape index: {}]   ;;  %s238_s1 = inlined_call_operand.vmem [shape: f32[2,32], index: 1, kind: input, shape index: {}]   ;;  %s239_s2 = inlined_call_operand.vmem [shape: f32[8,2], index: 2, kind: output, shape index: {}]  }
   0x1   :  { %s13_s10 = sshll.u32 %s189_s9, 4  ;;  %s165_s13 = scalar_lea.hbm %s237_s0, 256  ;;  %s14_s10 = int_to_ptr.vmem [resolvable:$true] %s13_s10 }
   0x2   :  { %p166_p0 = scmp.ne.s32.totalorder %s237_s0, %s165_s13  ;;  %p169_p1 = scmp.lt.u32.totalorder %s165_s13, %s237_s0 }
   0x4   :  { %p171_p2 = pnand %p169_p1, %p166_p0 }
   0x6   :  { %174 = shalt.err (!%p171_p2)
}
   0x7   :  { %s175_s18 = scalar_lea.vmem %s14_s10, 256  ;;  %p180_p4 = scmp.lt.s32.totalorder %s14_s10, %s14_s10 }
   0x8   :  { %p176_p3 = scmp.ne.s32.totalorder %s14_s10, %s175_s18  ;;  %p181_p5 = scmp.lt.s32.totalorder %s175_s18, %s175_s18 }
   0xa   :  { %p182_p6 = por %p181_p5, %p180_p4 }
   0xc   :  { %p183_p7 = pnand %p182_p6, %p176_p3 }
   0xe   :  { %186 = shalt.err (!%p183_p7)
}
   0xf   :  { %s190_s19 = smov 32   ;;  %s191_s20 = smov 2  }
  0x10   :  { %19 = dma.hbm_to_vmem [thread:$0]  %s237_s0, 256, %s14_s10, [#allocation4], %s190_s19, %s190_s19, %s191_s20  }
  0x11   :  { %187 = dma.done.wait [#allocation4], 256  }
  0x12   :  { %188 = vsyncadd [#allocation4], 4294967040  ;;  %vm43_vm0 = vcmask 254976   ;;  %v26_v0 = vld [vmem:[#allocation3] sm:$0x3]  ;;  %v76_v25 = vlaneseq  ;;  %vm110_vm1 = vcmask 1041409  }
  0x13   :  { %v34_v1 = vld [vmem:[%s238_s1] sm:$0x3]  ;;  %v28_v2 = vld [vmem:[#allocation3 + $0x4] sm:$0x3]  ;;  %v27_v5 = vld [vmem:[#allocation3 + $0x2] sm:$0x3] }
  0x14   :  { %v35_v3 = vmul.f32 %v34_v1, %v26_v0  ;;  %v37_v4 = vmul.f32 %v34_v1, %v28_v2  ;;  %v29_v6 = vld [vmem:[#allocation3 + $0x6] sm:$0x3]  ;;  %v36_v7 = vmul.f32 %v34_v1, %v27_v5  ;;  %v30_v9 = vld [vmem:[#allocation3 + $0x8] sm:$0x3]  ;;  %v31_v10 = vld [vmem:[#allocation3 + $0xa] sm:$0x3] }
  0x15   :  { %v38_v8 = vmul.f32 %v34_v1, %v29_v6  ;;  %v39_v15 = vmul.f32 %v34_v1, %v30_v9  ;;  %v40_v16 = vmul.f32 %v34_v1, %v31_v10  ;;  %v32_v17 = vld [vmem:[#allocation3 + $0xc] sm:$0x3]  ;;  %v33_v18 = vld [vmem:[#allocation3 + $0xe] sm:$0x3]  ;;  %v77_v26 = vand.u32 127, %v76_v25 }
  0x16   :  { %v44_v11 = vsel %vm43_vm0, %v35_v3, 0.0  ;;  %v50_v12 = vsel %vm43_vm0, %v37_v4, 0.0  ;;  %v47_v13 = vsel %vm43_vm0, %v36_v7, 0.0  ;;  %v41_v21 = vmul.f32 %v34_v1, %v32_v17 }
  0x17   :  { %45 = vadd.xlane.f32.xlu0 %v44_v11  ;;  %51 = vadd.xlane.f32.xlu1 %v50_v12  ;;  %v53_v14 = vsel %vm43_vm0, %v38_v8, 0.0  ;;  %v56_v19 = vsel %vm43_vm0, %v39_v15, 0.0  ;;  %v59_v20 = vsel %vm43_vm0, %v40_v16, 0.0  ;;  %v42_v22 = vmul.f32 %v34_v1, %v33_v18 }
  0x18   :  { %v62_v23 = vsel %vm43_vm0, %v41_v21, 0.0  ;;  %v79_v27 = vshrl.u32 %v76_v25, 7  ;;  %vm112_vm2 = vcmask 1042434   ;;  %vm114_vm3 = vcmask 1043459  }
  0x19   :  { %v65_v24 = vsel %vm43_vm0, %v42_v22, 0.0  ;;  %vm116_vm4 = vcmask 1044484   ;;  %vm118_vm5 = vcmask 1045509   ;;  %vm120_vm6 = vcmask 1046534  }
  0x1a   :  { %v80_v30 = vsub.s32 %v77_v26, %v79_v27  ;;  %vm122_vm7 = vcmask 1047559   ;;  %vm126_vm8 = vcmask 15360  }
  0x1b   :  { %48 = vadd.xlane.f32.xlu0 %v47_v13  ;;  %54 = vadd.xlane.f32.xlu1 %v53_v14 }
  0x1f   :  { %57 = vadd.xlane.f32.xlu0 %v56_v19  ;;  %60 = vadd.xlane.f32.xlu1 %v59_v20 }
  0x23   :  { %63 = vadd.xlane.f32.xlu0 %v62_v23  ;;  %66 = vadd.xlane.f32.xlu1 %v65_v24 }
  0xa4   :  { %v46_v28 = vpop.xlane.xlu0 %45  ;;  %v52_v29 = vpop.xlane.xlu1 %51 }
  0xa5   :  { %v81_v33 = vrot.slane %v46_v28, %v80_v30  ;;  %v89_v36 = vrot.slane %v52_v29, %v80_v30 }
  0xa8   :  { %v49_v31 = vpop.xlane.xlu0 %48  ;;  %v55_v32 = vpop.xlane.xlu1 %54 }
  0xa9   :  { %v85_v34 = vrot.slane %v49_v31, %v80_v30  ;;  %v93_v35 = vrot.slane %v55_v32, %v80_v30 }
  0xab   :  { %v111_v37 = vsel %vm110_vm1, %v85_v34, %v81_v33 }
  0xac   :  { %v113_v38 = vsel %vm112_vm2, %v89_v36, %v111_v37  ;;  %v58_v39 = vpop.xlane.xlu0 %57  ;;  %v61_v40 = vpop.xlane.xlu1 %60 }
  0xad   :  { %v115_v41 = vsel %vm114_vm3, %v93_v35, %v113_v38  ;;  %v97_v42 = vrot.slane %v58_v39, %v80_v30  ;;  %v101_v43 = vrot.slane %v61_v40, %v80_v30 }
  0xaf   :  { %v117_v44 = vsel %vm116_vm4, %v97_v42, %v115_v41 }
  0xb0   :  { %v64_v45 = vpop.xlane.xlu0 %63  ;;  %v67_v46 = vpop.xlane.xlu1 %66  ;;  %v119_v49 = vsel %vm118_vm5, %v101_v43, %v117_v44 }
  0xb1   :  { %v105_v47 = vrot.slane %v64_v45, %v80_v30  ;;  %v109_v48 = vrot.slane %v67_v46, %v80_v30 }
  0xb3   :  { %v121_v50 = vsel %vm120_vm6, %v105_v47, %v119_v49 }
  0xb4   :  { %v123_v51 = vsel %vm122_vm7, %v109_v48, %v121_v50 }
  0xb5   :  { %127 = vst.msk [vmem:[#allocation2] sm:$0xff] %vm126_vm8, %v123_v51 }
  0xbc   :  { %v132_v52 = vld [vmem:[#allocation2] sm:$0xff] }
  0xbd   :  { %v133_v53 = vsel %vm126_vm8, %v132_v52, -inf }
  0xbe   :  { %v134_v54 = vrot.slane %v133_v53, 4 }
  0xc0   :  { %v135_v55 = vmax.f32 %v133_v53, %v134_v54 }
  0xc2   :  { %v136_v56 = vrot.slane %v135_v55, 2 }
  0xc4   :  { %v137_v57 = vmax.f32 %v135_v55, %v136_v56 }
  0xc6   :  { %v138_v58 = vrot.slane %v137_v57, 1 }
  0xc8   :  { %v139_v59 = vmax.f32 %v137_v57, %v138_v58 }
  0xca   :  { %v140_v60 = vsub.f32 %v132_v52, %v139_v59 }
  0xcc   :  { %v141_v61 = vmul.f32 1.442695, %v140_v60 }
  0xce   :  { %161 = vpow2.f32 %v141_v61 }
  0xd8   :  { %v162_v62 = vpop.eup %161 }
  0xd9   :  { %v143_v63 = vsel %vm126_vm8, %v162_v62, 0.0 }
  0xda   :  { %v144_v0 = vrot.slane %v143_v63, 4 }
  0xdc   :  { %v145_v1 = vadd.f32 %v144_v0, %v143_v63 }
  0xde   :  { %v146_v2 = vrot.slane %v145_v1, 2 }
  0xe0   :  { %v147_v3 = vadd.f32 %v146_v2, %v145_v1 }
  0xe2   :  { %v148_v4 = vrot.slane %v147_v3, 1 }
  0xe4   :  { %v149_v5 = vadd.f32 %v148_v4, %v147_v3 }
  0xe6   :  { %163 = vrcp.f32 %v149_v5 }
  0xf0   :  { %v164_v6 = vpop.eup %163 }
  0xf1   :  { %v151_v7 = vmul.f32 %v164_v6, %v162_v62 }
  0xf3   :  { %152 = vst.msk [vmem:[%s239_s2] sm:$0xff] %vm126_vm8, %v151_v7 }
  0xf4   :  { %157 = vsyncpa [#allocation4], 1 }

</bundles_post_ra>
